<compile_context>
chip_gen: v6e
topology: v6e:2x2x1
jax: 0.10.0
libtpu: 0.0.40
codegen_flags: <defaults>
</compile_context>

<pallas_src>
import functools
import math

import jax
import jax.numpy as jnp
from jax import lax
from jax.experimental import pallas as pl
from jax.experimental.pallas import tpu as pltpu

_SQRT_HALF = 0.7071067811865476        # 1/sqrt(2)
_SQRT_2_OVER_PI = 0.7978845608028654   # sqrt(2/pi)
_GELU_TANH_C = 0.044715


def _head_transform_kernel(x_ref, w_ref, p_ref, o_ref, *, eps, approximate_gelu):
    """One (TM, H) token tile: y = LayerNorm(gelu(x @ W + b)).

    p_ref packs [linear bias; LN weight; LN bias] as a single (3, H) f32 slab
    so the three tiny parameter vectors ride in one DMA.
    """
    # MXU operands in the weight's compute dtype (bf16 by default); the cast
    # of the activation tile is a cheap VPU op, the accumulate stays f32.
    x = x_ref[...].astype(w_ref.dtype)           # (TM, H)
    w = w_ref[...]                               # (H, H), (in, out) layout
    b = p_ref[0:1, :]                            # (1, H) f32
    gamma = p_ref[1:2, :]                        # (1, H) f32
    beta = p_ref[2:3, :]                         # (1, H) f32

    h = jnp.dot(x, w, preferred_element_type=jnp.float32) + b   # f32 (TM, H)

    if approximate_gelu:
        # tanh GELU: transcendental goes to the EUP slot, keeping the 4-wide
        # VALU free (erf's polynomial was the binding slot on v6e/v7x).
        inner = _SQRT_2_OVER_PI * (h + _GELU_TANH_C * h * h * h)
        h = 0.5 * h * (1.0 + jnp.tanh(inner))
    else:
        # Exact erf form — matches torch's default "gelu" activation.
        h = 0.5 * h * (1.0 + lax.erf(h * _SQRT_HALF))

    # One-pass LayerNorm statistics over the hidden (lane) axis, all in f32.
    mu = jnp.mean(h, axis=-1, keepdims=True)
    mean_sq = jnp.mean(h * h, axis=-1, keepdims=True)
    var = jnp.maximum(mean_sq - mu * mu, 0.0)    # guard catastrophic cancel
    y = (h - mu) * lax.rsqrt(var + eps) * gamma + beta

    o_ref[...] = y.astype(o_ref.dtype)


def bert_prediction_head_transform(hidden_states, w, b, ln_w, ln_b, *,
                                   eps=1e-12, block_tokens=512,
                                   approximate_gelu=True,
                                   mxu_dtype=jnp.bfloat16):
    """Fused forward pass.

    hidden_states: (..., H)
    w:             (H, H) in (in, out) layout, i.e. torch_linear.weight.T
    b, ln_w, ln_b: (H,)
    """
    orig_shape = hidden_states.shape
    H = orig_shape[-1]
    x = hidden_states.reshape(-1, H)
    N = x.shape[0]
    out_dtype = hidden_states.dtype

    def round_up(v, m):
        return (v + m - 1) // m * m

    # Token tile: multiple of 8 sublanes.  In production prefer multiples of
    # 256 (v6e/v7x MXU tile) / 128 (v5e); the 512 default satisfies both.
    tm = max(8, min(round_up(block_tokens, 8), round_up(N, 8)))
    grid = (pl.cdiv(N, tm),)          # ragged last block handled by Pallas

    # Weight staged once in the MXU compute dtype (constant index_map keeps it
    # VMEM-resident across all grid steps).
    w_c = w.astype(mxu_dtype)

    # Pack the three (H,) parameter vectors into one lane-dense f32 slab.
    params = jnp.stack(
        [b.reshape(H), ln_w.reshape(H), ln_b.reshape(H)], axis=0
    ).astype(jnp.float32)

    # VMEM budget: double-buffered x/out tiles + resident weight + f32
    # intermediates, 1.5x headroom, capped so it fits every generation's VMEM
    # (v7x has only 64 MiB per TensorCore).
    x_b = x.dtype.itemsize
    o_b = jnp.dtype(out_dtype).itemsize
    w_b = jnp.dtype(mxu_dtype).itemsize
    vmem_est = (2 * tm * H * (x_b + o_b)      # pipelined in/out token tiles
                + 2 * H * H * w_b             # weight (conservative: 2 bufs)
                + 2 * 3 * H * 4               # packed params
                + 6 * tm * H * 4)             # f32 intermediates
    vmem_limit = int(min(64 << 20, max(16 << 20, int(1.5 * vmem_est))))

    kernel = functools.partial(_head_transform_kernel, eps=eps,
                               approximate_gelu=approximate_gelu)

    def run(single_buffer_resident):
        resident_kwargs = (
            dict(pipeline_mode=pl.Buffered(1)) if single_buffer_resident else {})
        return pl.pallas_call(
            kernel,
            grid=grid,
            in_specs=[
                pl.BlockSpec((tm, H), lambda i: (i, 0)),              # tokens
                pl.BlockSpec((H, H), lambda i: (0, 0), **resident_kwargs),
                pl.BlockSpec((3, H), lambda i: (0, 0), **resident_kwargs),
            ],
            out_specs=pl.BlockSpec((tm, H), lambda i: (i, 0)),
            out_shape=jax.ShapeDtypeStruct((N, H), out_dtype),
            compiler_params=pltpu.CompilerParams(
                dimension_semantics=("parallel",),
                vmem_limit_bytes=vmem_limit),
        )(x, w_c, params)

    try:
        # Resident blocks single-buffered (their second pipeline buffer is
        # never used) -> frees VMEM for bigger token tiles.
        out = run(single_buffer_resident=True)
    except Exception:
        # pipeline_mode=pl.Buffered(1) not supported on this build; default
        # double-buffering is functionally identical.
        out = run(single_buffer_resident=False)

    return out.reshape(orig_shape)


# -------------------- pure-JAX reference (for verification) -----------------
def ref_head_transform(x, w, b, ln_w, ln_b, *, eps=1e-12, approximate_gelu=True):
    h = x @ w + b
    if approximate_gelu:
        h = 0.5 * h * (1.0 + jnp.tanh(_SQRT_2_OVER_PI * (h + _GELU_TANH_C * h ** 3)))
    else:
        h = 0.5 * h * (1.0 + lax.erf(h * _SQRT_HALF))
    mu = h.mean(-1, keepdims=True)
    var = ((h - mu) ** 2).mean(-1, keepdims=True)
    return (h - mu) / jnp.sqrt(var + eps) * ln_w + ln_b


if __name__ == "__main__":
    # S=60 makes N=120, which is not a multiple of the 32-token tile below, so
    # the ragged-last-block path is exercised on hardware.
    B, S, H = 2, 60, 32
    eps = 1e-12                      # BERT layer_norm_eps

    key = jax.random.PRNGKey(0)
    kx, kw, kb, kg, kbe = jax.random.split(key, 5)

    x = jax.random.normal(kx, (B, S, H), dtype=jnp.float32)
    # Linear weight stored as (in, out) = torch_weight.T
    w = jax.random.normal(kw, (H, H), dtype=jnp.float32) * (1.0 / math.sqrt(H))
    b = 0.1 * jax.random.normal(kb, (H,), dtype=jnp.float32)
    ln_w = 1.0 + 0.1 * jax.random.normal(kg, (H,), dtype=jnp.float32)
    ln_b = 0.1 * jax.random.normal(kbe, (H,), dtype=jnp.float32)

    # 1) Default fast path: tanh-GELU + bf16 MXU operands (f32 accumulate).
    out = bert_prediction_head_transform(
        x, w, b, ln_w, ln_b, eps=eps, block_tokens=32)
    out = jax.block_until_ready(out)
    ref = ref_head_transform(x, w, b, ln_w, ln_b, eps=eps, approximate_gelu=True)
    assert out.shape == ref.shape and out.dtype == ref.dtype
    err = float(jnp.max(jnp.abs(out - ref)))
    assert jnp.allclose(out, ref, atol=5e-2, rtol=5e-2), err   # bf16 matmul tol

    # 2) Exact-erf GELU (torch's default "gelu") with f32 MXU for a tight check.
    out_exact = bert_prediction_head_transform(
        x, w, b, ln_w, ln_b, eps=eps, block_tokens=32,
        approximate_gelu=False, mxu_dtype=jnp.float32)
    out_exact = jax.block_until_ready(out_exact)
    ref_exact = ref_head_transform(x, w, b, ln_w, ln_b, eps=eps,
                                   approximate_gelu=False)
    err_exact = float(jnp.max(jnp.abs(out_exact - ref_exact)))
    assert jnp.allclose(out_exact, ref_exact, atol=1e-4, rtol=1e-4), err_exact

    print("KERNEL_OK")
</pallas_src>

<mosaic_0001>
module attributes {stable_mosaic.version = 11 : i64} {
  func.func @_head_transform_kernel(%arg0: i32, %arg1: memref<32x32xf32, #tpu.memory_space<vmem>>, %arg2: memref<32x32xbf16, #tpu.memory_space<vmem>>, %arg3: memref<3x32xf32, #tpu.memory_space<vmem>>, %arg4: memref<32x32xf32, #tpu.memory_space<vmem>>) attributes {dimension_semantics = [#tpu.dimension_semantics<parallel>], iteration_bounds = array<i64: 4>, scalar_prefetch = 0 : i64, scratch_operands = 0 : i64, tpu.core_type = #tpu.core_type<tc>, window_params = [{transform_indices = @transform_0, window_bounds = array<i64: 32, 32>}, {pipeline_mode = #tpu.pipeline_mode<synchronous>, transform_indices = @transform_1, window_bounds = array<i64: 32, 32>}, {pipeline_mode = #tpu.pipeline_mode<synchronous>, transform_indices = @transform_2, window_bounds = array<i64: 3, 32>}, {transform_indices = @transform_3, window_bounds = array<i64: 32, 32>}]} {
    %c0 = arith.constant 0 : index
    %c0_0 = arith.constant 0 : index
    %0 = vector.load %arg1[%c0, %c0_0] : memref<32x32xf32, #tpu.memory_space<vmem>>, vector<32x32xf32>
    %1 = arith.truncf %0 : vector<32x32xf32> to vector<32x32xbf16>
    %c0_1 = arith.constant 0 : index
    %c0_2 = arith.constant 0 : index
    %2 = vector.load %arg2[%c0_1, %c0_2] : memref<32x32xbf16, #tpu.memory_space<vmem>>, vector<32x32xbf16>
    %c0_3 = arith.constant 0 : index
    %c0_4 = arith.constant 0 : index
    %3 = vector.load %arg3[%c0_3, %c0_4] : memref<3x32xf32, #tpu.memory_space<vmem>>, vector<1x32xf32>
    %c1 = arith.constant 1 : index
    %c0_5 = arith.constant 0 : index
    %4 = vector.load %arg3[%c1, %c0_5] : memref<3x32xf32, #tpu.memory_space<vmem>>, vector<1x32xf32>
    %c2 = arith.constant 2 : index
    %c0_6 = arith.constant 0 : index
    %5 = vector.load %arg3[%c2, %c0_6] : memref<3x32xf32, #tpu.memory_space<vmem>>, vector<1x32xf32>
    %cst = arith.constant dense<0.000000e+00> : vector<32x32xf32>
    %6 = tpu.matmul %1, %2, %cst {dimension_numbers = #tpu.dot_dimension_numbers<[1], [0], [0], [1], [0, 0, 1, 1], [], []>} : vector<32x32xbf16>, vector<32x32xbf16>, vector<32x32xf32> -> vector<32x32xf32>
    %7 = vector.broadcast %3 : vector<1x32xf32> to vector<32x32xf32>
    %8 = arith.addf %6, %7 : vector<32x32xf32>
    %cst_7 = arith.constant 4.471500e-02 : f32
    %9 = vector.broadcast %cst_7 : f32 to vector<32x32xf32>
    %10 = arith.mulf %9, %8 : vector<32x32xf32>
    %11 = arith.mulf %10, %8 : vector<32x32xf32>
    %12 = arith.mulf %11, %8 : vector<32x32xf32>
    %13 = arith.addf %8, %12 : vector<32x32xf32>
    %cst_8 = arith.constant 0.797884583 : f32
    %14 = vector.broadcast %cst_8 : f32 to vector<32x32xf32>
    %15 = arith.mulf %14, %13 : vector<32x32xf32>
    %cst_9 = arith.constant 5.000000e-01 : f32
    %16 = vector.broadcast %cst_9 : f32 to vector<32x32xf32>
    %17 = arith.mulf %16, %8 : vector<32x32xf32>
    %18 = math.tanh %15 : vector<32x32xf32>
    %cst_10 = arith.constant 1.000000e+00 : f32
    %19 = vector.broadcast %cst_10 : f32 to vector<32x32xf32>
    %20 = arith.addf %19, %18 : vector<32x32xf32>
    %21 = arith.mulf %17, %20 : vector<32x32xf32>
    %cst_11 = arith.constant dense<0.000000e+00> : vector<32xf32>
    %22 = vector.multi_reduction <add>, %21, %cst_11 [1] : vector<32x32xf32> to vector<32xf32>
    %23 = vector.shape_cast %22 : vector<32xf32> to vector<32x1xf32>
    %cst_12 = arith.constant 3.200000e+01 : f32
    %24 = vector.broadcast %cst_12 : f32 to vector<32x1xf32>
    %25 = arith.divf %23, %24 : vector<32x1xf32>
    %26 = arith.mulf %21, %21 : vector<32x32xf32>
    %cst_13 = arith.constant dense<0.000000e+00> : vector<32xf32>
    %27 = vector.multi_reduction <add>, %26, %cst_13 [1] : vector<32x32xf32> to vector<32xf32>
    %28 = vector.shape_cast %27 : vector<32xf32> to vector<32x1xf32>
    %cst_14 = arith.constant 3.200000e+01 : f32
    %29 = vector.broadcast %cst_14 : f32 to vector<32x1xf32>
    %30 = arith.divf %28, %29 : vector<32x1xf32>
    %31 = arith.mulf %25, %25 : vector<32x1xf32>
    %32 = arith.subf %30, %31 : vector<32x1xf32>
    %cst_15 = arith.constant 0.000000e+00 : f32
    %33 = vector.broadcast %cst_15 : f32 to vector<32x1xf32>
    %34 = arith.maximumf %32, %33 : vector<32x1xf32>
    %35 = vector.broadcast %25 : vector<32x1xf32> to vector<32x32xf32>
    %36 = arith.subf %21, %35 : vector<32x32xf32>
    %cst_16 = arith.constant 9.99999996E-13 : f32
    %37 = vector.broadcast %cst_16 : f32 to vector<32x1xf32>
    %38 = arith.addf %34, %37 : vector<32x1xf32>
    %39 = math.rsqrt %38 : vector<32x1xf32>
    %40 = vector.broadcast %39 : vector<32x1xf32> to vector<32x32xf32>
    %41 = arith.mulf %36, %40 : vector<32x32xf32>
    %42 = vector.broadcast %4 : vector<1x32xf32> to vector<32x32xf32>
    %43 = arith.mulf %41, %42 : vector<32x32xf32>
    %44 = vector.broadcast %5 : vector<1x32xf32> to vector<32x32xf32>
    %45 = arith.addf %43, %44 : vector<32x32xf32>
    %c0_17 = arith.constant 0 : index
    %c0_18 = arith.constant 0 : index
    %46 = vector.load %arg4[%c0_17, %c0_18] : memref<32x32xf32, #tpu.memory_space<vmem>>, vector<32x32xf32>
    tpu.vector_store %arg4[%c0_17, %c0_18], %45 {strides = array<i32>} : memref<32x32xf32, #tpu.memory_space<vmem>>, vector<32x32xf32>,
    return
  }
  func.func @transform_0(%arg0: i32) -> (i32, i32) {
    %c0_i32 = arith.constant 0 : i32
    %c0_i32_0 = arith.constant 0 : i32
    return %arg0, %c0_i32 : i32, i32
  }
  func.func @transform_1(%arg0: i32) -> (i32, i32) {
    %c0_i32 = arith.constant 0 : i32
    %c0_i32_0 = arith.constant 0 : i32
    %c0_i32_1 = arith.constant 0 : i32
    return %c0_i32, %c0_i32_0 : i32, i32
  }
  func.func @transform_2(%arg0: i32) -> (i32, i32) {
    %c0_i32 = arith.constant 0 : i32
    %c0_i32_0 = arith.constant 0 : i32
    %c0_i32_1 = arith.constant 0 : i32
    return %c0_i32, %c0_i32_0 : i32, i32
  }
  func.func @transform_3(%arg0: i32) -> (i32, i32) {
    %c0_i32 = arith.constant 0 : i32
    %c0_i32_0 = arith.constant 0 : i32
    return %arg0, %c0_i32 : i32, i32
  }
}

module attributes {stable_mosaic.version = 11 : i64} {
  func.func @_head_transform_kernel(%arg0: i32, %arg1: memref<32x32xf32, #tpu.memory_space<vmem>>, %arg2: memref<32x32xbf16, #tpu.memory_space<vmem>>, %arg3: memref<3x32xf32, #tpu.memory_space<vmem>>, %arg4: memref<32x32xf32, #tpu.memory_space<vmem>>) attributes {dimension_semantics = [#tpu.dimension_semantics<parallel>], iteration_bounds = array<i64: 4>, scalar_prefetch = 0 : i64, scratch_operands = 0 : i64, tpu.core_type = #tpu.core_type<tc>, window_params = [{transform_indices = @transform_0, window_bounds = array<i64: 32, 32>}, {pipeline_mode = #tpu.pipeline_mode<synchronous>, transform_indices = @transform_1, window_bounds = array<i64: 32, 32>}, {pipeline_mode = #tpu.pipeline_mode<synchronous>, transform_indices = @transform_2, window_bounds = array<i64: 3, 32>}, {transform_indices = @transform_3, window_bounds = array<i64: 32, 32>}]} {
    %c0 = arith.constant 0 : index
    %c0_0 = arith.constant 0 : index
    %0 = vector.load %arg1[%c0, %c0_0] : memref<32x32xf32, #tpu.memory_space<vmem>>, vector<32x32xf32>
    %1 = arith.truncf %0 : vector<32x32xf32> to vector<32x32xbf16>
    %c0_1 = arith.constant 0 : index
    %c0_2 = arith.constant 0 : index
    %2 = vector.load %arg2[%c0_1, %c0_2] : memref<32x32xbf16, #tpu.memory_space<vmem>>, vector<32x32xbf16>
    %c0_3 = arith.constant 0 : index
    %c0_4 = arith.constant 0 : index
    %3 = vector.load %arg3[%c0_3, %c0_4] : memref<3x32xf32, #tpu.memory_space<vmem>>, vector<1x32xf32>
    %c1 = arith.constant 1 : index
    %c0_5 = arith.constant 0 : index
    %4 = vector.load %arg3[%c1, %c0_5] : memref<3x32xf32, #tpu.memory_space<vmem>>, vector<1x32xf32>
    %c2 = arith.constant 2 : index
    %c0_6 = arith.constant 0 : index
    %5 = vector.load %arg3[%c2, %c0_6] : memref<3x32xf32, #tpu.memory_space<vmem>>, vector<1x32xf32>
    %cst = arith.constant dense<0.000000e+00> : vector<32x32xf32>
    %6 = tpu.matmul %1, %2, %cst {dimension_numbers = #tpu.dot_dimension_numbers<[1], [0], [0], [1], [0, 0, 1, 1], [], []>} : vector<32x32xbf16>, vector<32x32xbf16>, vector<32x32xf32> -> vector<32x32xf32>
    %7 = vector.broadcast %3 : vector<1x32xf32> to vector<32x32xf32>
    %8 = arith.addf %6, %7 : vector<32x32xf32>
    %cst_7 = arith.constant 4.471500e-02 : f32
    %9 = vector.broadcast %cst_7 : f32 to vector<32x32xf32>
    %10 = arith.mulf %9, %8 : vector<32x32xf32>
    %11 = arith.mulf %10, %8 : vector<32x32xf32>
    %12 = arith.mulf %11, %8 : vector<32x32xf32>
    %13 = arith.addf %8, %12 : vector<32x32xf32>
    %cst_8 = arith.constant 0.797884583 : f32
    %14 = vector.broadcast %cst_8 : f32 to vector<32x32xf32>
    %15 = arith.mulf %14, %13 : vector<32x32xf32>
    %cst_9 = arith.constant 5.000000e-01 : f32
    %16 = vector.broadcast %cst_9 : f32 to vector<32x32xf32>
    %17 = arith.mulf %16, %8 : vector<32x32xf32>
    %18 = math.tanh %15 : vector<32x32xf32>
    %cst_10 = arith.constant 1.000000e+00 : f32
    %19 = vector.broadcast %cst_10 : f32 to vector<32x32xf32>
    %20 = arith.addf %19, %18 : vector<32x32xf32>
    %21 = arith.mulf %17, %20 : vector<32x32xf32>
    %cst_11 = arith.constant dense<0.000000e+00> : vector<32xf32>
    %22 = vector.multi_reduction <add>, %21, %cst_11 [1] : vector<32x32xf32> to vector<32xf32>
    %23 = vector.shape_cast %22 : vector<32xf32> to vector<32x1xf32>
    %cst_12 = arith.constant 3.200000e+01 : f32
    %24 = vector.broadcast %cst_12 : f32 to vector<32x1xf32>
    %25 = arith.divf %23, %24 : vector<32x1xf32>
    %26 = arith.mulf %21, %21 : vector<32x32xf32>
    %cst_13 = arith.constant dense<0.000000e+00> : vector<32xf32>
    %27 = vector.multi_reduction <add>, %26, %cst_13 [1] : vector<32x32xf32> to vector<32xf32>
    %28 = vector.shape_cast %27 : vector<32xf32> to vector<32x1xf32>
    %cst_14 = arith.constant 3.200000e+01 : f32
    %29 = vector.broadcast %cst_14 : f32 to vector<32x1xf32>
    %30 = arith.divf %28, %29 : vector<32x1xf32>
    %31 = arith.mulf %25, %25 : vector<32x1xf32>
    %32 = arith.subf %30, %31 : vector<32x1xf32>
    %cst_15 = arith.constant 0.000000e+00 : f32
    %33 = vector.broadcast %cst_15 : f32 to vector<32x1xf32>
    %34 = arith.maximumf %32, %33 : vector<32x1xf32>
    %35 = vector.broadcast %25 : vector<32x1xf32> to vector<32x32xf32>
    %36 = arith.subf %21, %35 : vector<32x32xf32>
    %cst_16 = arith.constant 9.99999996E-13 : f32
    %37 = vector.broadcast %cst_16 : f32 to vector<32x1xf32>
    %38 = arith.addf %34, %37 : vector<32x1xf32>
    %39 = math.rsqrt %38 : vector<32x1xf32>
    %40 = vector.broadcast %39 : vector<32x1xf32> to vector<32x32xf32>
    %41 = arith.mulf %36, %40 : vector<32x32xf32>
    %42 = vector.broadcast %4 : vector<1x32xf32> to vector<32x32xf32>
    %43 = arith.mulf %41, %42 : vector<32x32xf32>
    %44 = vector.broadcast %5 : vector<1x32xf32> to vector<32x32xf32>
    %45 = arith.addf %43, %44 : vector<32x32xf32>
    %c0_17 = arith.constant 0 : index
    %c0_18 = arith.constant 0 : index
    %46 = vector.load %arg4[%c0_17, %c0_18] : memref<32x32xf32, #tpu.memory_space<vmem>>, vector<32x32xf32>
    tpu.vector_store %arg4[%c0_17, %c0_18], %45 {strides = array<i32>} : memref<32x32xf32, #tpu.memory_space<vmem>>, vector<32x32xf32>,
    return
  }
  func.func @transform_0(%arg0: i32) -> (i32, i32) {
    %c0_i32 = arith.constant 0 : i32
    %c0_i32_0 = arith.constant 0 : i32
    return %arg0, %c0_i32 : i32, i32
  }
  func.func @transform_1(%arg0: i32) -> (i32, i32) {
    %c0_i32 = arith.constant 0 : i32
    %c0_i32_0 = arith.constant 0 : i32
    %c0_i32_1 = arith.constant 0 : i32
    return %c0_i32, %c0_i32_0 : i32, i32
  }
  func.func @transform_2(%arg0: i32) -> (i32, i32) {
    %c0_i32 = arith.constant 0 : i32
    %c0_i32_0 = arith.constant 0 : i32
    %c0_i32_1 = arith.constant 0 : i32
    return %c0_i32, %c0_i32_0 : i32, i32
  }
  func.func @transform_3(%arg0: i32) -> (i32, i32) {
    %c0_i32 = arith.constant 0 : i32
    %c0_i32_0 = arith.constant 0 : i32
    return %arg0, %c0_i32 : i32, i32
  }
}

</mosaic_0001>

<bundles_post_ra>
// kernel: tpu_custom_call.1
= control target key start
LH: loop header
LB: loop body
LE: loop exit
PB: predicated region body
PF: predicated region fallthrough
CT: control target
= control target key end

     0   :  { %s887_s12 = smov 0   ;;  %s889_s13 = smov 0   ;;  %s1040_s0 = inlined_call_operand.vmem [shape: f32[120,32], index: 0, kind: input, shape index: {}]   ;;  %s1041_s1 = inlined_call_operand.vmem [shape: bf16[32,32], index: 1, kind: input, shape index: {}]   ;;  %s1042_s2 = inlined_call_operand.vmem [shape: f32[3,32], index: 2, kind: input, shape index: {}]   ;;  %s1043_s3 = inlined_call_operand.vmem [shape: f32[120,32], index: 3, kind: output, shape index: {}]  }
   0x1   :  { %s891_s14 = smov 0  }
   0x2 LB: > { %s900_s15 = sadd.s32 4294967295, %s833_s14   ;;  %s902_s16 = sadd.s32 1, %s833_s14   ;;  %s833_s14 = sphi %s891_s14, %s1050_s14   ;;  %s829_s13 = sphi %s889_s13, %s1049_s13   ;;  %s825_s12 = sphi %s887_s12, %s1048_s12  }
   0x3   : > { %s85_s17 = ssub.s32 %s833_s14, %s902_s16  ;;  %s88_s18 = sadd.s32 1, %s829_s13 }
   0x4   : > { %p86_p0 = scmp.eq.s32.totalorder %s85_s17, 0  ;;  %p98_p1 = scmp.ne.s32.totalorder %s829_s13, %s825_s12 }
   0x5   : > { %p99_p2 = scmp.eq.s32.totalorder %s900_s15, 3  ;;  %p630_p3 = scmp.ge.s32.totalorder %s833_s14, 1 }
   0x6   : > { %s910_s19 = scalar_select %p86_p0, %s829_s13, %s88_s18  }
   0x7   : > { %p912_p4 = por %p99_p2, %p98_p1  ;;  %p146_p5 = scmp.lt.s32.totalorder %s833_s14, 5 }
   0x9   : > { %p147_p6 = pnand %p630_p3, %p146_p5 }
   0xa   : > { %s920_s23 = sshll.u32 (!%p147_p6), %s900_s15, 2  ;;  %s170_s6 = sand.u32 (!%p147_p6), 1, %s825_s12  }
   0xb   : > { %150 = sbr.rel (%p147_p6) target bundleno = 469 (0x1d5), region = 32  ;;  %p178_p7 = scmp.lt.s32.totalorder (!%p147_p6), %s920_s23, 14 }
   0xc   : > { %s631_s9 = sshll.u32 (!%p147_p6), %s170_s6, 5 }
   0xd   : > { %s974_s12 = scalar_lea.vmem (!%p147_p6), [#allocation2], %s631_s9  }
  0x10   : > { %v761_v0 = vld [vmem:[%s1041_s1 + $0x8] sm:$0xff]   ;;  %v762_v1 = vld [vmem:[%s1041_s1] sm:$0xff]   ;;  %s179_s26 = scalar_select %p178_p7, %s920_s23, 14  ;;  %vm222_vm0 = vcmask 261120  }
  0x11   : > { %665 = vmatprep.subr.bf16.mxu0 %v761_v0  ;;  %v634_v8 = vld [vmem:[%s1042_s2] ss:$0 sm:$0xff]  ;;  %s407_s14 = ssub.s32 (%p912_p4), 15, %s920_s23  ;;  %s658_s17 = sshll.u32 (%p912_p4), %s900_s15, 5 }
  0x12   : > { %666 = vmatpush3.bf16.msra.mxu0 %v761_v0  ;;  %s633_s27 = sshll.u32 %s179_s26, 3  ;;  %p408_p8 = scmp.lt.s32.totalorder (%p912_p4), %s407_s14, 4 }
  0x13   : > { %667 = vmatprep.subr.bf16.mxu0 %v762_v1  ;;  %s181_s30 = scalar_lea.vmem %s1040_s0, %s633_s27  ;;  %s991_s22 = scalar_lea.vmem (%p912_p4), %s1043_s3, %s658_s17  }
  0x14   : > { %v193_v2 = vld [vmem:[%s181_s30] sm:$0xff]  ;;  %v194_v3 = vld [vmem:[%s181_s30 + $0x8] sm:$0xff]  ;;  %v195_v4 = vld [vmem:[%s181_s30 + $0x10] sm:$0xff] }
  0x15   : > { %v197_v5 = vpack.c.bf16 %v194_v3, %v193_v2  ;;  %v196_v6 = vld [vmem:[%s181_s30 + $0x18] sm:$0xff] }
  0x16   : > { %668 = vmatpush3.bf16.msra.mxu0 %v762_v1  ;;  %v198_v7 = vpack.c.bf16 %v196_v6, %v195_v4 }
  0x17   : > { %669 = vmatprep.mubr.msk.bf16.mxu0 %vm222_vm0, %v197_v5 }
  0x19   : > { %670 = vmatmul.mubr.msk.bf16.vlgmr.msra.gmra.mxu0 %vm222_vm0, %v198_v7 }
  0xd9   : > { %v671_v9 = vpop.f32.mrf.mxu0 }
  0xda   : > { %v272_v10 = vadd.f32 %v671_v9, %v634_v8 }
  0xdb   : > { %v263_v11 = vpop.f32.mrf.mxu0 }
  0xdc   : > { %v280_v12 = vmul.f32 0.044715, %v272_v10  ;;  %v264_v13 = vadd.f32 %v634_v8, %v263_v11  ;;  %v300_v38 = vmul.f32 0.5, %v272_v10 }
  0xdd   : > { %v672_v14 = vpop.f32.mrf.mxu0 }
  0xde   : > { %v284_v15 = vmul.f32 %v280_v12, %v272_v10  ;;  %v278_v16 = vmul.f32 0.044715, %v264_v13  ;;  %v275_v17 = vadd.f32 %v672_v14, %v634_v8  ;;  %v298_v42 = vmul.f32 0.5, %v264_v13 }
  0xdf   : > { %v266_v18 = vpop.f32.mrf.mxu0 }
  0xe0   : > { %v282_v19 = vmul.f32 %v278_v16, %v264_v13  ;;  %v281_v20 = vmul.f32 0.044715, %v275_v17  ;;  %v267_v21 = vadd.f32 %v634_v8, %v266_v18  ;;  %v288_v22 = vmul.f32 %v284_v15, %v272_v10 }
  0xe1   : > { %v301_v47 = vmul.f32 0.5, %v275_v17 }
  0xe2   : > { %v285_v23 = vmul.f32 %v281_v20, %v275_v17  ;;  %v279_v24 = vmul.f32 0.044715, %v267_v21  ;;  %v292_v25 = vadd.f32 %v288_v22, %v272_v10  ;;  %v286_v26 = vmul.f32 %v282_v19, %v264_v13 }
  0xe3   : > { %v299_v50 = vmul.f32 0.5, %v267_v21 }
  0xe4   : > { %v289_v27 = vmul.f32 %v285_v23, %v275_v17  ;;  %v283_v28 = vmul.f32 %v279_v24, %v267_v21  ;;  %v296_v29 = vmul.f32 0.7978846, %v292_v25  ;;  %v290_v30 = vadd.f32 %v286_v26, %v264_v13 }
  0xe6   : > { %v287_v31 = vmul.f32 %v283_v28, %v267_v21  ;;  %763 = vtanh.f32 %v296_v29  ;;  %v294_v32 = vmul.f32 0.7978846, %v290_v30  ;;  %v293_v33 = vadd.f32 %v289_v27, %v275_v17 }
  0xe8   : > { %v291_v34 = vadd.f32 %v287_v31, %v267_v21  ;;  %765 = vtanh.f32 %v294_v32  ;;  %v297_v35 = vmul.f32 0.7978846, %v293_v33 }
  0xea   : > { %767 = vtanh.f32 %v297_v35  ;;  %v295_v36 = vmul.f32 0.7978846, %v291_v34  ;;  %v639_v35 = vld [vmem:[%s1042_s2 + $0x1] ss:$0 sm:$0xff] }
  0xec   : > { %769 = vtanh.f32 %v295_v36 }
  0xf3   : > { %v764_v37 = vpop.eup %763 }
  0xf4   : > { %v308_v39 = vadd.f32 1.0, %v764_v37  ;;  %v640_v37 = vld [vmem:[%s1042_s2 + $0x2] ss:$0 sm:$0xff] }
  0xf5   : > { %v766_v40 = vpop.eup %765 }
  0xf6   : > { %v935_v41 = vmul.f32 %v308_v39, %v300_v38  ;;  %v306_v43 = vadd.f32 1.0, %v766_v40 }
  0xf7   : > { %v768_v44 = vpop.eup %767 }
  0xf8   : > { %v320_v45 = vsel %vm222_vm0, %v935_v41, 0.0  ;;  %v939_v46 = vmul.f32 %v306_v43, %v298_v42  ;;  %v309_v48 = vadd.f32 1.0, %v768_v44  ;;  %v333_v62 = vmul.f32 %v935_v41, %v935_v41 }
  0xf9   : > { %v770_v49 = vpop.eup %769  ;;  %321 = vadd.xlane.f32.xlu1 %v320_v45 }
  0xfa   : > { %v314_v51 = vsel %vm222_vm0, %v939_v46, 0.0  ;;  %v943_v52 = vmul.f32 %v309_v48, %v301_v47  ;;  %v331_v53 = vmul.f32 %v939_v46, %v939_v46  ;;  %v307_v54 = vadd.f32 1.0, %v770_v49 }
  0xfb   : > { %315 = vadd.xlane.f32.xlu0 %v314_v51  ;;  %v341_v0 = vsel %vm222_vm0, %v333_v62, 0.0 }
  0xfc   : > { %v323_v55 = vsel %vm222_vm0, %v943_v52, 0.0  ;;  %v949_v56 = vmul.f32 %v307_v54, %v299_v50  ;;  %v335_v57 = vsel %vm222_vm0, %v331_v53, 0.0  ;;  %v334_v60 = vmul.f32 %v943_v52, %v943_v52 }
  0xfd   : > { %324 = vadd.xlane.f32.xlu1 %v323_v55 }
  0xfe   : > { %v332_v58 = vmul.f32 %v949_v56, %v949_v56  ;;  %v317_v61 = vsel %vm222_vm0, %v949_v56, 0.0  ;;  %v344_v63 = vsel %vm222_vm0, %v334_v60, 0.0 }
  0xff   : > { %336 = vadd.xlane.f32.xlu0 %v335_v57 }
 0x100   : > { %v338_v59 = vsel %vm222_vm0, %v332_v58, 0.0 }
 0x101   : > { %339 = vadd.xlane.f32.xlu1 %v338_v59 }
 0x103   : > { %318 = vadd.xlane.f32.xlu0 %v317_v61 }
 0x105   : > { %345 = vadd.xlane.f32.xlu1 %v344_v63 }
 0x107   : > { %342 = vadd.xlane.f32.xlu0 %v341_v0 }
 0x182   : > { %v322_v1 = vpop.xlane.xlu1 %321 }
 0x183   : > { %v329_v11 = vmul.f32 0.03125, %v322_v1 }
 0x184   : > { %v316_v2 = vpop.xlane.xlu0 %315 }
 0x185   : > { %v327_v3 = vmul.f32 0.03125, %v316_v2  ;;  %v353_v21 = vmul.f32 %v329_v11, %v329_v11  ;;  %v365_v45 = vsub.f32 %v935_v41, %v329_v11 }
 0x186   : > { %v325_v4 = vpop.xlane.xlu1 %324 }
 0x187   : > { %v351_v6 = vmul.f32 %v327_v3, %v327_v3  ;;  %v330_v8 = vmul.f32 0.03125, %v325_v4  ;;  %v363_v33 = vsub.f32 %v939_v46, %v327_v3 }
 0x188   : > { %v337_v5 = vpop.xlane.xlu0 %336 }
 0x189   : > { %v347_v7 = vmul.f32 0.03125, %v337_v5  ;;  %v354_v15 = vmul.f32 %v330_v8, %v330_v8  ;;  %v366_v43 = vsub.f32 %v943_v52, %v330_v8 }
 0x18a   : > { %v340_v9 = vpop.xlane.xlu1 %339 }
 0x18b   : > { %v355_v10 = vsub.f32 %v347_v7, %v351_v6  ;;  %v348_v18 = vmul.f32 0.03125, %v340_v9 }
 0x18c   : > { %v319_v12 = vpop.xlane.xlu0 %318 }
 0x18d   : > { %v359_v13 = vmax.f32 %v355_v10, 0.0  ;;  %v328_v14 = vmul.f32 0.03125, %v319_v12 }
 0x18e   : > { %v346_v16 = vpop.xlane.xlu1 %345 }
 0x18f   : > { %v367_v17 = vadd.f32 1e-12, %v359_v13  ;;  %v352_v19 = vmul.f32 %v328_v14, %v328_v14  ;;  %v350_v20 = vmul.f32 0.03125, %v346_v16  ;;  %v364_v40 = vsub.f32 %v949_v56, %v328_v14 }
 0x190   : > { %v343_v22 = vpop.xlane.xlu0 %342 }
 0x191   : > { %771 = vrsqrt.f32 %v367_v17  ;;  %v356_v23 = vsub.f32 %v348_v18, %v352_v19  ;;  %v358_v24 = vsub.f32 %v350_v20, %v354_v15  ;;  %v349_v25 = vmul.f32 0.03125, %v343_v22 }
 0x193   : > { %v360_v26 = vmax.f32 %v356_v23, 0.0  ;;  %v362_v27 = vmax.f32 %v358_v24, 0.0  ;;  %v357_v28 = vsub.f32 %v349_v25, %v353_v21 }
 0x195   : > { %v368_v29 = vadd.f32 1e-12, %v360_v26  ;;  %v370_v30 = vadd.f32 1e-12, %v362_v27  ;;  %v361_v31 = vmax.f32 %v357_v28, 0.0 }
 0x197   : > { %773 = vrsqrt.f32 %v368_v29  ;;  %v369_v32 = vadd.f32 1e-12, %v361_v31 }
 0x198   : > { %775 = vrsqrt.f32 %v370_v30 }
 0x199   : > { %777 = vrsqrt.f32 %v369_v32 }
 0x19e   : > { %v772_v34 = vpop.eup %771 }
 0x19f   : > { %v375_v36 = vmul.f32 %v772_v34, %v363_v33 }
 0x1a1   : > { %v383_v38 = vmul.f32 %v639_v35, %v375_v36 }
 0x1a3   : > { %v391_v39 = vadd.f32 %v640_v37, %v383_v38 }
 0x1a4   : > { %v774_v42 = vpop.eup %773 }
 0x1a5   : > { %v776_v44 = vpop.eup %775  ;;  %v376_v46 = vmul.f32 %v774_v42, %v364_v40  ;;  %395 = vst.msk [vmem:[%s974_s12] sm:$0xff] %vm222_vm0, %v391_v39 }
 0x1a6   : > { %v778_v47 = vpop.eup %777  ;;  %v378_v48 = vmul.f32 %v776_v44, %v366_v43 }
 0x1a7   : > { %v384_v49 = vmul.f32 %v639_v35, %v376_v46  ;;  %v377_v50 = vmul.f32 %v778_v47, %v365_v45 }
 0x1a8   : > { %v386_v51 = vmul.f32 %v639_v35, %v378_v48 }
 0x1a9   : > { %v392_v53 = vadd.f32 %v640_v37, %v384_v49  ;;  %v385_v54 = vmul.f32 %v639_v35, %v377_v50  ;;  %405 = sbr.rel (!%p912_p4) target bundleno = 469 (0x1d5), region = 36 }
 0x1aa   : > { %v394_v52 = vadd.f32 %v640_v37, %v386_v51 }
 0x1ab   : > { %396 = vst.msk [vmem:[%s974_s12 + $0x8] sm:$0xff] %vm222_vm0, %v392_v53  ;;  %v393_v41 = vadd.f32 %v640_v37, %v385_v54 }
 0x1ac   : > { %398 = vst.msk [vmem:[%s974_s12 + $0x18] sm:$0xff] %vm222_vm0, %v394_v52 }
 0x1ad   : > { %397 = vst.msk [vmem:[%s974_s12 + $0x10] sm:$0xff] %vm222_vm0, %v393_v41 }
 0x1ae   : > { %s1052_s14 = smov (!%p408_p8, %s407_s14), 4 }
 0x1af   : > { %s643_s24 = sshll.u32 %s1052_s14, 7 }
 0x1b0   : > { %p646_p9 = scmp.eq.s32.totalorder %s643_s24, 0 }
 0x1b1   : > { %s997_s25 = sshrl.u32 (!%p646_p9), %s1052_s14, 2 }
 0x1b2   : > { %416 = sbr.rel (%p646_p9) target bundleno = 469 (0x1d5), region = 40  ;;  %p647_p10 = scmp.le.s32.totalorder (!%p646_p9), %s997_s25, 0 }
 0x1b7   : > { %583 = sbr.rel (%p647_p10) target bundleno = 452 (0x1c4), region = 116  ;;  %s1045_s15 = smov (!%p647_p10), %s991_s22 }
 0x1b8   : > { %s1046_s20 = smov (!%p647_p10), %s974_s12  ;;  %s1006_s23 = smov (!%p647_p10), 0  }
 0x1b9   : > { %s847_s26 = smov (!%p647_p10), 0  }
 0x1bc LB: >> { %v485_v55 = vld [vmem:[%s841_s20] sm:$0xff]  ;;  %v487_v56 = vld [vmem:[%s841_s20 + $0x8] sm:$0xff]  ;;  %v489_v57 = vld [vmem:[%s841_s20 + $0x10] sm:$0xff]  ;;  %s493_s27 = sadd.s32 1, %s845_s23  ;;  %s479_s26 = sadd.s32 1, %s849_s26   ;;  %s849_s26 = sphi %s847_s26, %s479_s26   ;;  %s845_s23 = sphi %s1006_s23, %s1047_s23   ;;  %s841_s20 = sphi %s1046_s20, %s498_s20   ;;  %s837_s15 = sphi %s1045_s15, %s499_s15  }
 0x1bd   : >> { %486 = vst [vmem:[%s837_s15] sm:$0xff] %v485_v55  ;;  %488 = vst [vmem:[%s837_s15 + $0x8] sm:$0xff] %v487_v56  ;;  %v491_v58 = vld [vmem:[%s841_s20 + $0x18] sm:$0xff]  ;;  %p494_p11 = scmp.ge.s32.totalorder %s493_s27, %s997_s25  ;;  %p478_p12 = scmp.ge.s32.totalorder %s479_s26, %s997_s25 }
 0x1be   : >> { %490 = vst [vmem:[%s837_s15 + $0x10] sm:$0xff] %v489_v57  ;;  %492 = vst [vmem:[%s837_s15 + $0x18] sm:$0xff] %v491_v58 }
 0x1bf   : >> { %s1054_s27 = smov (%p494_p11, %s493_s27), 0  ;;  %481 = sbr.rel (!%p478_p12) target bundleno = 444 (0x1bc), region = 122 }
 0x1c0   : >> { %s648_s28 = sshll.u32 %s1054_s27, 5  ;;  %s1047_s23 = smov %s1054_s27 }
 0x1c1   : >> { %s498_s20 = scalar_lea.vmem %s974_s12, %s648_s28 [#allocation2]   ;;  %s499_s15 = scalar_lea.vmem %s991_s22, %s648_s28  }
 0x1c4 PF: > { %s1022_s29 = sand.u32 3, %s1052_s14   ;;  %s659_s30 = sshll.u32 %s997_s25, 5 }
 0x1c5   : > { %s504_s4 = scalar_lea.vmem %s974_s12, %s659_s30 [#allocation2]   ;;  %s506_s5 = scalar_lea.vmem %s991_s22, %s659_s30  }
 0x1c6   : > { %p653_p13 = scmp.le.s32.totalorder %s1022_s29, 0 }
 0x1c7   : > { %s851_s6 = smov (!%p653_p13), %s506_s5   ;;  %s855_s7 = smov (!%p653_p13), %s504_s4  }
 0x1c8   : > { %597 = sbr.rel (%p653_p13) target bundleno = 469 (0x1d5), region = 127  ;;  %s859_s8 = smov (!%p653_p13), 0  }
 0x1c9   : > { %s863_s9 = smov (!%p653_p13), 0  }
 0x1cd LB: >> { %v516_v59 = vld [vmem:[%s857_s7] sm:$0xff]  ;;  %s518_s10 = sadd.s32 1, %s861_s8  ;;  %s510_s9 = sadd.s32 1, %s865_s9   ;;  %s865_s9 = sphi %s863_s9, %s510_s9   ;;  %s861_s8 = sphi %s859_s8, %s860_s8   ;;  %s857_s7 = sphi %s855_s7, %s523_s7   ;;  %s853_s6 = sphi %s851_s6, %s524_s6  }
 0x1ce   : >> { %517 = vst [vmem:[%s853_s6] sm:$0xff] %v516_v59  ;;  %p519_p0 = scmp.ge.s32.totalorder %s518_s10, %s1022_s29  ;;  %p509_p1 = scmp.ge.s32.totalorder %s510_s9, %s1022_s29 }
 0x1d0   : >> { %s1056_s10 = smov (%p519_p0, %s518_s10), 0  ;;  %512 = sbr.rel (!%p509_p1) target bundleno = 461 (0x1cd), region = 133 }
 0x1d1   : >> { %s654_s11 = sshll.u32 %s1056_s10, 3  ;;  %s860_s8 = smov %s1056_s10  }
 0x1d2   : >> { %s523_s7 = scalar_lea.vmem %s504_s4, %s654_s11 [#allocation2]   ;;  %s524_s6 = scalar_lea.vmem %s506_s5, %s654_s11  }
 0x1d5 PF: > { %p10_p2 = scmp.ge.s32.totalorder %s902_s16, 6   ;;  %s1048_s12 = smov %s829_s13 }
 0x1d6   : > { %s1049_s13 = smov %s910_s19  ;;  %s1050_s14 = smov %s902_s16 }
 0x1d7   :  { %12 = sbr.rel (!%p10_p2) target bundleno = 2 (0x2), region = 144 }

// kernel: tpu_custom_call.1
= control target key start
LH: loop header
LB: loop body
LE: loop exit
PB: predicated region body
PF: predicated region fallthrough
CT: control target
= control target key end

     0   :  { %s887_s12 = smov 0   ;;  %s889_s13 = smov 0   ;;  %s1040_s0 = inlined_call_operand.vmem [shape: f32[120,32], index: 0, kind: input, shape index: {}]   ;;  %s1041_s1 = inlined_call_operand.vmem [shape: bf16[32,32], index: 1, kind: input, shape index: {}]   ;;  %s1042_s2 = inlined_call_operand.vmem [shape: f32[3,32], index: 2, kind: input, shape index: {}]   ;;  %s1043_s3 = inlined_call_operand.vmem [shape: f32[120,32], index: 3, kind: output, shape index: {}]  }
   0x1   :  { %s891_s14 = smov 0  }
   0x2 LB: > { %s900_s15 = sadd.s32 4294967295, %s833_s14   ;;  %s902_s16 = sadd.s32 1, %s833_s14   ;;  %s833_s14 = sphi %s891_s14, %s1050_s14   ;;  %s829_s13 = sphi %s889_s13, %s1049_s13   ;;  %s825_s12 = sphi %s887_s12, %s1048_s12  }
   0x3   : > { %s85_s17 = ssub.s32 %s833_s14, %s902_s16  ;;  %s88_s18 = sadd.s32 1, %s829_s13 }
   0x4   : > { %p86_p0 = scmp.eq.s32.totalorder %s85_s17, 0  ;;  %p98_p1 = scmp.ne.s32.totalorder %s829_s13, %s825_s12 }
   0x5   : > { %p99_p2 = scmp.eq.s32.totalorder %s900_s15, 3  ;;  %p630_p3 = scmp.ge.s32.totalorder %s833_s14, 1 }
   0x6   : > { %s910_s19 = scalar_select %p86_p0, %s829_s13, %s88_s18  }
   0x7   : > { %p912_p4 = por %p99_p2, %p98_p1  ;;  %p146_p5 = scmp.lt.s32.totalorder %s833_s14, 5 }
   0x9   : > { %p147_p6 = pnand %p630_p3, %p146_p5 }
   0xa   : > { %s920_s23 = sshll.u32 (!%p147_p6), %s900_s15, 2  ;;  %s170_s6 = sand.u32 (!%p147_p6), 1, %s825_s12  }
   0xb   : > { %150 = sbr.rel (%p147_p6) target bundleno = 469 (0x1d5), region = 32  ;;  %p178_p7 = scmp.lt.s32.totalorder (!%p147_p6), %s920_s23, 14 }
   0xc   : > { %s631_s9 = sshll.u32 (!%p147_p6), %s170_s6, 5 }
   0xd   : > { %s974_s12 = scalar_lea.vmem (!%p147_p6), [#allocation2], %s631_s9  }
  0x10   : > { %v761_v0 = vld [vmem:[%s1041_s1 + $0x8] sm:$0xff]   ;;  %v762_v1 = vld [vmem:[%s1041_s1] sm:$0xff]   ;;  %s179_s26 = scalar_select %p178_p7, %s920_s23, 14  ;;  %vm222_vm0 = vcmask 261120  }
  0x11   : > { %665 = vmatprep.subr.bf16.mxu0 %v761_v0  ;;  %v634_v8 = vld [vmem:[%s1042_s2] ss:$0 sm:$0xff]  ;;  %s407_s14 = ssub.s32 (%p912_p4), 15, %s920_s23  ;;  %s658_s17 = sshll.u32 (%p912_p4), %s900_s15, 5 }
  0x12   : > { %666 = vmatpush3.bf16.msra.mxu0 %v761_v0  ;;  %s633_s27 = sshll.u32 %s179_s26, 3  ;;  %p408_p8 = scmp.lt.s32.totalorder (%p912_p4), %s407_s14, 4 }
  0x13   : > { %667 = vmatprep.subr.bf16.mxu0 %v762_v1  ;;  %s181_s30 = scalar_lea.vmem %s1040_s0, %s633_s27  ;;  %s991_s22 = scalar_lea.vmem (%p912_p4), %s1043_s3, %s658_s17  }
  0x14   : > { %v193_v2 = vld [vmem:[%s181_s30] sm:$0xff]  ;;  %v194_v3 = vld [vmem:[%s181_s30 + $0x8] sm:$0xff]  ;;  %v195_v4 = vld [vmem:[%s181_s30 + $0x10] sm:$0xff] }
  0x15   : > { %v197_v5 = vpack.c.bf16 %v194_v3, %v193_v2  ;;  %v196_v6 = vld [vmem:[%s181_s30 + $0x18] sm:$0xff] }
  0x16   : > { %668 = vmatpush3.bf16.msra.mxu0 %v762_v1  ;;  %v198_v7 = vpack.c.bf16 %v196_v6, %v195_v4 }
  0x17   : > { %669 = vmatprep.mubr.msk.bf16.mxu0 %vm222_vm0, %v197_v5 }
  0x19   : > { %670 = vmatmul.mubr.msk.bf16.vlgmr.msra.gmra.mxu0 %vm222_vm0, %v198_v7 }
  0xd9   : > { %v671_v9 = vpop.f32.mrf.mxu0 }
  0xda   : > { %v272_v10 = vadd.f32 %v671_v9, %v634_v8 }
  0xdb   : > { %v263_v11 = vpop.f32.mrf.mxu0 }
  0xdc   : > { %v280_v12 = vmul.f32 0.044715, %v272_v10  ;;  %v264_v13 = vadd.f32 %v634_v8, %v263_v11  ;;  %v300_v38 = vmul.f32 0.5, %v272_v10 }
  0xdd   : > { %v672_v14 = vpop.f32.mrf.mxu0 }
  0xde   : > { %v284_v15 = vmul.f32 %v280_v12, %v272_v10  ;;  %v278_v16 = vmul.f32 0.044715, %v264_v13  ;;  %v275_v17 = vadd.f32 %v672_v14, %v634_v8  ;;  %v298_v42 = vmul.f32 0.5, %v264_v13 }
  0xdf   : > { %v266_v18 = vpop.f32.mrf.mxu0 }
  0xe0   : > { %v282_v19 = vmul.f32 %v278_v16, %v264_v13  ;;  %v281_v20 = vmul.f32 0.044715, %v275_v17  ;;  %v267_v21 = vadd.f32 %v634_v8, %v266_v18  ;;  %v288_v22 = vmul.f32 %v284_v15, %v272_v10 }
  0xe1   : > { %v301_v47 = vmul.f32 0.5, %v275_v17 }
  0xe2   : > { %v285_v23 = vmul.f32 %v281_v20, %v275_v17  ;;  %v279_v24 = vmul.f32 0.044715, %v267_v21  ;;  %v292_v25 = vadd.f32 %v288_v22, %v272_v10  ;;  %v286_v26 = vmul.f32 %v282_v19, %v264_v13 }
  0xe3   : > { %v299_v50 = vmul.f32 0.5, %v267_v21 }
  0xe4   : > { %v289_v27 = vmul.f32 %v285_v23, %v275_v17  ;;  %v283_v28 = vmul.f32 %v279_v24, %v267_v21  ;;  %v296_v29 = vmul.f32 0.7978846, %v292_v25  ;;  %v290_v30 = vadd.f32 %v286_v26, %v264_v13 }
  0xe6   : > { %v287_v31 = vmul.f32 %v283_v28, %v267_v21  ;;  %763 = vtanh.f32 %v296_v29  ;;  %v294_v32 = vmul.f32 0.7978846, %v290_v30  ;;  %v293_v33 = vadd.f32 %v289_v27, %v275_v17 }
  0xe8   : > { %v291_v34 = vadd.f32 %v287_v31, %v267_v21  ;;  %765 = vtanh.f32 %v294_v32  ;;  %v297_v35 = vmul.f32 0.7978846, %v293_v33 }
  0xea   : > { %767 = vtanh.f32 %v297_v35  ;;  %v295_v36 = vmul.f32 0.7978846, %v291_v34  ;;  %v639_v35 = vld [vmem:[%s1042_s2 + $0x1] ss:$0 sm:$0xff] }
  0xec   : > { %769 = vtanh.f32 %v295_v36 }
  0xf3   : > { %v764_v37 = vpop.eup %763 }
  0xf4   : > { %v308_v39 = vadd.f32 1.0, %v764_v37  ;;  %v640_v37 = vld [vmem:[%s1042_s2 + $0x2] ss:$0 sm:$0xff] }
  0xf5   : > { %v766_v40 = vpop.eup %765 }
  0xf6   : > { %v935_v41 = vmul.f32 %v308_v39, %v300_v38  ;;  %v306_v43 = vadd.f32 1.0, %v766_v40 }
  0xf7   : > { %v768_v44 = vpop.eup %767 }
  0xf8   : > { %v320_v45 = vsel %vm222_vm0, %v935_v41, 0.0  ;;  %v939_v46 = vmul.f32 %v306_v43, %v298_v42  ;;  %v309_v48 = vadd.f32 1.0, %v768_v44  ;;  %v333_v62 = vmul.f32 %v935_v41, %v935_v41 }
  0xf9   : > { %v770_v49 = vpop.eup %769  ;;  %321 = vadd.xlane.f32.xlu1 %v320_v45 }
  0xfa   : > { %v314_v51 = vsel %vm222_vm0, %v939_v46, 0.0  ;;  %v943_v52 = vmul.f32 %v309_v48, %v301_v47  ;;  %v331_v53 = vmul.f32 %v939_v46, %v939_v46  ;;  %v307_v54 = vadd.f32 1.0, %v770_v49 }
  0xfb   : > { %315 = vadd.xlane.f32.xlu0 %v314_v51  ;;  %v341_v0 = vsel %vm222_vm0, %v333_v62, 0.0 }
  0xfc   : > { %v323_v55 = vsel %vm222_vm0, %v943_v52, 0.0  ;;  %v949_v56 = vmul.f32 %v307_v54, %v299_v50  ;;  %v335_v57 = vsel %vm222_vm0, %v331_v53, 0.0  ;;  %v334_v60 = vmul.f32 %v943_v52, %v943_v52 }
  0xfd   : > { %324 = vadd.xlane.f32.xlu1 %v323_v55 }
  0xfe   : > { %v332_v58 = vmul.f32 %v949_v56, %v949_v56  ;;  %v317_v61 = vsel %vm222_vm0, %v949_v56, 0.0  ;;  %v344_v63 = vsel %vm222_vm0, %v334_v60, 0.0 }
  0xff   : > { %336 = vadd.xlane.f32.xlu0 %v335_v57 }
 0x100   : > { %v338_v59 = vsel %vm222_vm0, %v332_v58, 0.0 }
 0x101   : > { %339 = vadd.xlane.f32.xlu1 %v338_v59 }
 0x103   : > { %318 = vadd.xlane.f32.xlu0 %v317_v61 }
 0x105   : > { %345 = vadd.xlane.f32.xlu1 %v344_v63 }
 0x107   : > { %342 = vadd.xlane.f32.xlu0 %v341_v0 }
 0x182   : > { %v322_v1 = vpop.xlane.xlu1 %321 }
 0x183   : > { %v329_v11 = vmul.f32 0.03125, %v322_v1 }
 0x184   : > { %v316_v2 = vpop.xlane.xlu0 %315 }
 0x185   : > { %v327_v3 = vmul.f32 0.03125, %v316_v2  ;;  %v353_v21 = vmul.f32 %v329_v11, %v329_v11  ;;  %v365_v45 = vsub.f32 %v935_v41, %v329_v11 }
 0x186   : > { %v325_v4 = vpop.xlane.xlu1 %324 }
 0x187   : > { %v351_v6 = vmul.f32 %v327_v3, %v327_v3  ;;  %v330_v8 = vmul.f32 0.03125, %v325_v4  ;;  %v363_v33 = vsub.f32 %v939_v46, %v327_v3 }
 0x188   : > { %v337_v5 = vpop.xlane.xlu0 %336 }
 0x189   : > { %v347_v7 = vmul.f32 0.03125, %v337_v5  ;;  %v354_v15 = vmul.f32 %v330_v8, %v330_v8  ;;  %v366_v43 = vsub.f32 %v943_v52, %v330_v8 }
 0x18a   : > { %v340_v9 = vpop.xlane.xlu1 %339 }
 0x18b   : > { %v355_v10 = vsub.f32 %v347_v7, %v351_v6  ;;  %v348_v18 = vmul.f32 0.03125, %v340_v9 }
 0x18c   : > { %v319_v12 = vpop.xlane.xlu0 %318 }
 0x18d   : > { %v359_v13 = vmax.f32 %v355_v10, 0.0  ;;  %v328_v14 = vmul.f32 0.03125, %v319_v12 }
 0x18e   : > { %v346_v16 = vpop.xlane.xlu1 %345 }
 0x18f   : > { %v367_v17 = vadd.f32 1e-12, %v359_v13  ;;  %v352_v19 = vmul.f32 %v328_v14, %v328_v14  ;;  %v350_v20 = vmul.f32 0.03125, %v346_v16  ;;  %v364_v40 = vsub.f32 %v949_v56, %v328_v14 }
 0x190   : > { %v343_v22 = vpop.xlane.xlu0 %342 }
 0x191   : > { %771 = vrsqrt.f32 %v367_v17  ;;  %v356_v23 = vsub.f32 %v348_v18, %v352_v19  ;;  %v358_v24 = vsub.f32 %v350_v20, %v354_v15  ;;  %v349_v25 = vmul.f32 0.03125, %v343_v22 }
 0x193   : > { %v360_v26 = vmax.f32 %v356_v23, 0.0  ;;  %v362_v27 = vmax.f32 %v358_v24, 0.0  ;;  %v357_v28 = vsub.f32 %v349_v25, %v353_v21 }
 0x195   : > { %v368_v29 = vadd.f32 1e-12, %v360_v26  ;;  %v370_v30 = vadd.f32 1e-12, %v362_v27  ;;  %v361_v31 = vmax.f32 %v357_v28, 0.0 }
 0x197   : > { %773 = vrsqrt.f32 %v368_v29  ;;  %v369_v32 = vadd.f32 1e-12, %v361_v31 }
 0x198   : > { %775 = vrsqrt.f32 %v370_v30 }
 0x199   : > { %777 = vrsqrt.f32 %v369_v32 }
 0x19e   : > { %v772_v34 = vpop.eup %771 }
 0x19f   : > { %v375_v36 = vmul.f32 %v772_v34, %v363_v33 }
 0x1a1   : > { %v383_v38 = vmul.f32 %v639_v35, %v375_v36 }
 0x1a3   : > { %v391_v39 = vadd.f32 %v640_v37, %v383_v38 }
 0x1a4   : > { %v774_v42 = vpop.eup %773 }
 0x1a5   : > { %v776_v44 = vpop.eup %775  ;;  %v376_v46 = vmul.f32 %v774_v42, %v364_v40  ;;  %395 = vst.msk [vmem:[%s974_s12] sm:$0xff] %vm222_vm0, %v391_v39 }
 0x1a6   : > { %v778_v47 = vpop.eup %777  ;;  %v378_v48 = vmul.f32 %v776_v44, %v366_v43 }
 0x1a7   : > { %v384_v49 = vmul.f32 %v639_v35, %v376_v46  ;;  %v377_v50 = vmul.f32 %v778_v47, %v365_v45 }
 0x1a8   : > { %v386_v51 = vmul.f32 %v639_v35, %v378_v48 }
 0x1a9   : > { %v392_v53 = vadd.f32 %v640_v37, %v384_v49  ;;  %v385_v54 = vmul.f32 %v639_v35, %v377_v50  ;;  %405 = sbr.rel (!%p912_p4) target bundleno = 469 (0x1d5), region = 36 }
 0x1aa   : > { %v394_v52 = vadd.f32 %v640_v37, %v386_v51 }
 0x1ab   : > { %396 = vst.msk [vmem:[%s974_s12 + $0x8] sm:$0xff] %vm222_vm0, %v392_v53  ;;  %v393_v41 = vadd.f32 %v640_v37, %v385_v54 }
 0x1ac   : > { %398 = vst.msk [vmem:[%s974_s12 + $0x18] sm:$0xff] %vm222_vm0, %v394_v52 }
 0x1ad   : > { %397 = vst.msk [vmem:[%s974_s12 + $0x10] sm:$0xff] %vm222_vm0, %v393_v41 }
 0x1ae   : > { %s1052_s14 = smov (!%p408_p8, %s407_s14), 4 }
 0x1af   : > { %s643_s24 = sshll.u32 %s1052_s14, 7 }
 0x1b0   : > { %p646_p9 = scmp.eq.s32.totalorder %s643_s24, 0 }
 0x1b1   : > { %s997_s25 = sshrl.u32 (!%p646_p9), %s1052_s14, 2 }
 0x1b2   : > { %416 = sbr.rel (%p646_p9) target bundleno = 469 (0x1d5), region = 40  ;;  %p647_p10 = scmp.le.s32.totalorder (!%p646_p9), %s997_s25, 0 }
 0x1b7   : > { %583 = sbr.rel (%p647_p10) target bundleno = 452 (0x1c4), region = 116  ;;  %s1045_s15 = smov (!%p647_p10), %s991_s22 }
 0x1b8   : > { %s1046_s20 = smov (!%p647_p10), %s974_s12  ;;  %s1006_s23 = smov (!%p647_p10), 0  }
 0x1b9   : > { %s847_s26 = smov (!%p647_p10), 0  }
 0x1bc LB: >> { %v485_v55 = vld [vmem:[%s841_s20] sm:$0xff]  ;;  %v487_v56 = vld [vmem:[%s841_s20 + $0x8] sm:$0xff]  ;;  %v489_v57 = vld [vmem:[%s841_s20 + $0x10] sm:$0xff]  ;;  %s493_s27 = sadd.s32 1, %s845_s23  ;;  %s479_s26 = sadd.s32 1, %s849_s26   ;;  %s849_s26 = sphi %s847_s26, %s479_s26   ;;  %s845_s23 = sphi %s1006_s23, %s1047_s23   ;;  %s841_s20 = sphi %s1046_s20, %s498_s20   ;;  %s837_s15 = sphi %s1045_s15, %s499_s15  }
 0x1bd   : >> { %486 = vst [vmem:[%s837_s15] sm:$0xff] %v485_v55  ;;  %488 = vst [vmem:[%s837_s15 + $0x8] sm:$0xff] %v487_v56  ;;  %v491_v58 = vld [vmem:[%s841_s20 + $0x18] sm:$0xff]  ;;  %p494_p11 = scmp.ge.s32.totalorder %s493_s27, %s997_s25  ;;  %p478_p12 = scmp.ge.s32.totalorder %s479_s26, %s997_s25 }
 0x1be   : >> { %490 = vst [vmem:[%s837_s15 + $0x10] sm:$0xff] %v489_v57  ;;  %492 = vst [vmem:[%s837_s15 + $0x18] sm:$0xff] %v491_v58 }
 0x1bf   : >> { %s1054_s27 = smov (%p494_p11, %s493_s27), 0  ;;  %481 = sbr.rel (!%p478_p12) target bundleno = 444 (0x1bc), region = 122 }
 0x1c0   : >> { %s648_s28 = sshll.u32 %s1054_s27, 5  ;;  %s1047_s23 = smov %s1054_s27 }
 0x1c1   : >> { %s498_s20 = scalar_lea.vmem %s974_s12, %s648_s28 [#allocation2]   ;;  %s499_s15 = scalar_lea.vmem %s991_s22, %s648_s28  }
 0x1c4 PF: > { %s1022_s29 = sand.u32 3, %s1052_s14   ;;  %s659_s30 = sshll.u32 %s997_s25, 5 }
 0x1c5   : > { %s504_s4 = scalar_lea.vmem %s974_s12, %s659_s30 [#allocation2]   ;;  %s506_s5 = scalar_lea.vmem %s991_s22, %s659_s30  }
 0x1c6   : > { %p653_p13 = scmp.le.s32.totalorder %s1022_s29, 0 }
 0x1c7   : > { %s851_s6 = smov (!%p653_p13), %s506_s5   ;;  %s855_s7 = smov (!%p653_p13), %s504_s4  }
 0x1c8   : > { %597 = sbr.rel (%p653_p13) target bundleno = 469 (0x1d5), region = 127  ;;  %s859_s8 = smov (!%p653_p13), 0  }
 0x1c9   : > { %s863_s9 = smov (!%p653_p13), 0  }
 0x1cd LB: >> { %v516_v59 = vld [vmem:[%s857_s7] sm:$0xff]  ;;  %s518_s10 = sadd.s32 1, %s861_s8  ;;  %s510_s9 = sadd.s32 1, %s865_s9   ;;  %s865_s9 = sphi %s863_s9, %s510_s9   ;;  %s861_s8 = sphi %s859_s8, %s860_s8   ;;  %s857_s7 = sphi %s855_s7, %s523_s7   ;;  %s853_s6 = sphi %s851_s6, %s524_s6  }
 0x1ce   : >> { %517 = vst [vmem:[%s853_s6] sm:$0xff] %v516_v59  ;;  %p519_p0 = scmp.ge.s32.totalorder %s518_s10, %s1022_s29  ;;  %p509_p1 = scmp.ge.s32.totalorder %s510_s9, %s1022_s29 }
 0x1d0   : >> { %s1056_s10 = smov (%p519_p0, %s518_s10), 0  ;;  %512 = sbr.rel (!%p509_p1) target bundleno = 461 (0x1cd), region = 133 }
 0x1d1   : >> { %s654_s11 = sshll.u32 %s1056_s10, 3  ;;  %s860_s8 = smov %s1056_s10  }
 0x1d2   : >> { %s523_s7 = scalar_lea.vmem %s504_s4, %s654_s11 [#allocation2]   ;;  %s524_s6 = scalar_lea.vmem %s506_s5, %s654_s11  }
 0x1d5 PF: > { %p10_p2 = scmp.ge.s32.totalorder %s902_s16, 6   ;;  %s1048_s12 = smov %s829_s13 }
 0x1d6   : > { %s1049_s13 = smov %s910_s19  ;;  %s1050_s14 = smov %s902_s16 }
 0x1d7   :  { %12 = sbr.rel (!%p10_p2) target bundleno = 2 (0x2), region = 144 }

</bundles_post_ra>
